<compile_context>
chip_gen: v6e
topology: v6e:2x2x1
jax: 0.10.0
libtpu: 0.0.40
codegen_flags: <defaults>
</compile_context>

<pallas_src>
import jax
import jax.numpy as jnp
from jax.experimental import pallas as pl
from jax.experimental.pallas import tpu as pltpu

H1, H2 = 400, 300          # logical hidden sizes of the Actor MLP
LANE = 128                 # TPU lane width
SUBLANE = 8


def _round_up(n: int, m: int) -> int:
    return ((n + m - 1) // m) * m


def _cdiv(a: int, b: int) -> int:
    return -(-a // b)


H1P = _round_up(H1, LANE)  # 512
H2P = _round_up(H2, LANE)  # 384 (kept at 384 on purpose -- see header note)


# ----------------------------------------------------------------------------
# Kernel: whole 3-layer forward for one batch tile.  Weights/biases are
# VMEM-resident (constant index_map across the batch grid); x and the output
# tile stream per grid step.
# ----------------------------------------------------------------------------
def actor_kernel(ma_ref, x_ref, w1_ref, b1_ref, w2_ref, b2_ref, w3_ref, b3_ref,
                 o_ref):
    ma = ma_ref[0]                                   # f32 scalar from SMEM

    # layer 1: relu(x @ W1 + b1)   (bf16 MXU, f32 accumulation / epilogue)
    h = jnp.dot(x_ref[...].astype(jnp.bfloat16), w1_ref[...],
                preferred_element_type=jnp.float32) + b1_ref[...]
    h = jnp.maximum(h, 0.0)

    # layer 2: relu(h @ W2 + b2)
    h = jnp.dot(h.astype(jnp.bfloat16), w2_ref[...],
                preferred_element_type=jnp.float32) + b2_ref[...]
    h = jnp.maximum(h, 0.0)

    # layer 3: max_action * tanh(h @ W3 + b3)
    h = jnp.dot(h.astype(jnp.bfloat16), w3_ref[...],
                preferred_element_type=jnp.float32) + b3_ref[...]
    o_ref[...] = (ma * jnp.tanh(h)).astype(o_ref.dtype)


# ----------------------------------------------------------------------------
# Parameter handling
# ----------------------------------------------------------------------------
def init_actor_params(key, state_dim, action_dim):
    """Logical-shape f32 params mimicking torch.nn.Linear default init.
    Weights stored as (in_features, out_features); biases as (1, out)."""
    dims = [(state_dim, H1), (H1, H2), (H2, action_dim)]
    params = []
    for fan_in, fan_out in dims:
        key, kw, kb = jax.random.split(key, 3)
        bound = 1.0 / (fan_in ** 0.5)
        w = jax.random.uniform(kw, (fan_in, fan_out), jnp.float32,
                               minval=-bound, maxval=bound)
        b = jax.random.uniform(kb, (1, fan_out), jnp.float32,
                               minval=-bound, maxval=bound)
        params += [w, b]
    return tuple(params)


def pack_actor_params(params):
    """Zero-pad hidden/output dims to lane multiples and cast weights to bf16.
    Zero padding keeps the math exact: padded columns produce relu(0)=0 and
    padded K-rows are zero, so they contribute nothing."""
    w1, b1, w2, b2, w3, b3 = params
    state_dim = w1.shape[0]
    action_dim = w3.shape[1]
    out_p = _round_up(action_dim, LANE)

    def pad_w(w, rows, cols):
        out = jnp.zeros((rows, cols), jnp.bfloat16)
        return out.at[:w.shape[0], :w.shape[1]].set(w.astype(jnp.bfloat16))

    def pad_b(b, cols):
        out = jnp.zeros((1, cols), jnp.float32)
        return out.at[:, :b.shape[1]].set(b)

    return (pad_w(w1, state_dim, H1P), pad_b(b1, H1P),
            pad_w(w2, H1P, H2P),       pad_b(b2, H2P),
            pad_w(w3, H2P, out_p),     pad_b(b3, out_p))


# ----------------------------------------------------------------------------
# Batch tiling policy (perf review items 1 & 2)
# ----------------------------------------------------------------------------
def _choose_batch_tiling(B: int):
    """Pick (tile_rows, padded_batch).

    Small B (acting path): single tile -> no extra grid-step overhead.
    Large B: tiles of up to 1024 rows amortize the ~0.35us per-step overhead,
    and we keep >= 2 grid steps so the 'parallel' batch axis can be sharded
    across v7x's two TensorCores.  Peak VMEM at tb=1024 is ~7 MB, well inside
    the default scoped limit on v5e/v6e/v7x.
    """
    bp8 = _round_up(max(B, 1), SUBLANE)
    if bp8 <= 256:
        tb = bp8                                   # single tile, latency path
    else:
        n_tiles = max(2, _cdiv(bp8, 1024))         # >= 2 tiles, each <= ~1024
        tb = _round_up(_cdiv(bp8, n_tiles), SUBLANE)
    bp = _round_up(bp8, tb)
    return tb, bp


# ----------------------------------------------------------------------------
# Wrapper
# ----------------------------------------------------------------------------
def actor_forward(x, packed_params, max_action, action_dim,
                  out_dtype=jnp.float32, return_padded=False):
    """x: (B, state_dim) f32.  Returns (B, action_dim) in `out_dtype`
    (or the padded (B_pad, 128*k) array if return_padded=True)."""
    w1, b1, w2, b2, w3, b3 = packed_params
    B, state_dim = x.shape
    out_p = w3.shape[1]

    tb, bp = _choose_batch_tiling(B)
    if bp != B:
        x = jnp.pad(x, ((0, bp - B), (0, 0)))
    grid = (bp // tb,)

    ma = jnp.asarray([max_action], jnp.float32)      # runtime SMEM scalar

    def const_spec(shape):
        return pl.BlockSpec(shape, lambda i: (0,) * len(shape))

    # Advisory cost estimate so XLA schedules neighbours around this call.
    weight_elems = state_dim * H1P + H1P * H2P + H2P * out_p
    cost = pl.CostEstimate(
        flops=2 * bp * weight_elems,
        transcendentals=bp * out_p,                                  # tanh
        bytes_accessed=(bp * state_dim * 4                           # x (f32)
                        + weight_elems * 2                           # weights
                        + (H1P + H2P + out_p) * 4                    # biases
                        + bp * out_p * jnp.dtype(out_dtype).itemsize))

    out = pl.pallas_call(
        actor_kernel,
        out_shape=jax.ShapeDtypeStruct((bp, out_p), out_dtype),
        grid=grid,
        in_specs=[
            pl.BlockSpec(memory_space=pltpu.MemorySpace.SMEM),   # max_action
            pl.BlockSpec((tb, state_dim), lambda i: (i, 0)),     # x tile
            const_spec(w1.shape), const_spec(b1.shape),          # VMEM-resident
            const_spec(w2.shape), const_spec(b2.shape),
            const_spec(w3.shape), const_spec(b3.shape),
        ],
        out_specs=pl.BlockSpec((tb, out_p), lambda i: (i, 0)),
        compiler_params=pltpu.CompilerParams(
            dimension_semantics=("parallel",)),
        cost_estimate=cost,
    )(ma, x, w1, b1, w2, b2, w3, b3)

    if return_padded:
        return out                       # caller slices lazily (e.g. under jit)
    return out[:B, :action_dim]


# ----------------------------------------------------------------------------
# Pure-JAX references for correctness checks
# ----------------------------------------------------------------------------
def actor_reference_f32(x, params, max_action):
    w1, b1, w2, b2, w3, b3 = params
    h = jax.nn.relu(x @ w1 + b1)
    h = jax.nn.relu(h @ w2 + b2)
    return max_action * jnp.tanh(h @ w3 + b3)


def actor_reference_bf16(x, params, max_action):
    """Mimics the kernel's bf16-input / f32-accumulation matmuls."""
    w1, b1, w2, b2, w3, b3 = params
    bf, f32 = jnp.bfloat16, jnp.float32
    h = jax.nn.relu(jnp.dot(x.astype(bf), w1.astype(bf),
                            preferred_element_type=f32) + b1)
    h = jax.nn.relu(jnp.dot(h.astype(bf), w2.astype(bf),
                            preferred_element_type=f32) + b2)
    h = jnp.dot(h.astype(bf), w3.astype(bf), preferred_element_type=f32) + b3
    return max_action * jnp.tanh(h)


if __name__ == "__main__":
    key = jax.random.PRNGKey(0)
    kp, kx_small, kx_big = jax.random.split(key, 3)

    state_dim = 32
    action_dim = 8
    max_action = 2.0

    params = init_actor_params(kp, state_dim, action_dim)
    packed = pack_actor_params(params)

    # --- small-batch (acting) path: single tile, f32 output, strict check ---
    x_small = jax.random.normal(kx_small, (8, state_dim), jnp.float32)
    out_small = jax.block_until_ready(
        actor_forward(x_small, packed, max_action, action_dim))

    ref_small_bf16 = actor_reference_bf16(x_small, params, max_action)
    ref_small_f32 = actor_reference_f32(x_small, params, max_action)
    assert out_small.shape == (8, action_dim)
    # Tight check vs a reference applying the same bf16 matmul precision.
    assert jnp.allclose(out_small, ref_small_bf16, atol=5e-3, rtol=5e-3), \
        "small-batch mismatch vs bf16-precision reference"
    # Loose check vs the full-f32 reference (bf16 weight quantization error).
    assert jnp.allclose(out_small, ref_small_f32, atol=5e-2, rtol=5e-2), \
        "small-batch mismatch vs f32 reference"

    # --- larger batch: >= 2 grid tiles, bf16 output (bandwidth-optimized) ---
    x_big = jax.random.normal(kx_big, (384, state_dim), jnp.float32)
    out_big = jax.block_until_ready(
        actor_forward(x_big, packed, max_action, action_dim,
                      out_dtype=jnp.bfloat16))
    ref_big = actor_reference_bf16(x_big, params, max_action)
    assert out_big.shape == (384, action_dim)
    assert jnp.allclose(out_big.astype(jnp.float32), ref_big,
                        atol=2e-2, rtol=2e-2), \
        "large-batch mismatch vs bf16-precision reference"

    print("KERNEL_OK")
</pallas_src>

<mosaic_0001>
module attributes {stable_mosaic.version = 11 : i64} {
  func.func @actor_kernel(%arg0: i32, %arg1: memref<1xf32, #tpu.memory_space<smem>>, %arg2: memref<8x32xf32, #tpu.memory_space<vmem>>, %arg3: memref<32x512xbf16, #tpu.memory_space<vmem>>, %arg4: memref<1x512xf32, #tpu.memory_space<vmem>>, %arg5: memref<512x384xbf16, #tpu.memory_space<vmem>>, %arg6: memref<1x384xf32, #tpu.memory_space<vmem>>, %arg7: memref<384x128xbf16, #tpu.memory_space<vmem>>, %arg8: memref<1x128xf32, #tpu.memory_space<vmem>>, %arg9: memref<8x128xf32, #tpu.memory_space<vmem>>) attributes {dimension_semantics = [#tpu.dimension_semantics<parallel>], iteration_bounds = array<i64: 1>, scalar_prefetch = 0 : i64, scratch_operands = 0 : i64, tpu.core_type = #tpu.core_type<tc>, window_params = [{transform_indices = @transform_0, window_bounds = array<i64: 1>}, {transform_indices = @transform_1, window_bounds = array<i64: 8, 32>}, {pipeline_mode = #tpu.pipeline_mode<synchronous>, transform_indices = @transform_2, window_bounds = array<i64: 32, 512>}, {pipeline_mode = #tpu.pipeline_mode<synchronous>, transform_indices = @transform_3, window_bounds = array<i64: 1, 512>}, {pipeline_mode = #tpu.pipeline_mode<synchronous>, transform_indices = @transform_4, window_bounds = array<i64: 512, 384>}, {pipeline_mode = #tpu.pipeline_mode<synchronous>, transform_indices = @transform_5, window_bounds = array<i64: 1, 384>}, {pipeline_mode = #tpu.pipeline_mode<synchronous>, transform_indices = @transform_6, window_bounds = array<i64: 384, 128>}, {pipeline_mode = #tpu.pipeline_mode<synchronous>, transform_indices = @transform_7, window_bounds = array<i64: 1, 128>}, {transform_indices = @transform_8, window_bounds = array<i64: 8, 128>}]} {
    %c0 = arith.constant 0 : index
    %0 = memref.load %arg1[%c0] : memref<1xf32, #tpu.memory_space<smem>>
    %c0_0 = arith.constant 0 : index
    %c0_1 = arith.constant 0 : index
    %1 = vector.load %arg2[%c0_0, %c0_1] : memref<8x32xf32, #tpu.memory_space<vmem>>, vector<8x32xf32>
    %2 = arith.truncf %1 : vector<8x32xf32> to vector<8x32xbf16>
    %c0_2 = arith.constant 0 : index
    %c0_3 = arith.constant 0 : index
    %3 = vector.load %arg3[%c0_2, %c0_3] : memref<32x512xbf16, #tpu.memory_space<vmem>>, vector<32x512xbf16>
    %cst = arith.constant dense<0.000000e+00> : vector<8x512xf32>
    %4 = tpu.matmul %2, %3, %cst {dimension_numbers = #tpu.dot_dimension_numbers<[1], [0], [0], [1], [0, 0, 1, 1], [], []>} : vector<8x32xbf16>, vector<32x512xbf16>, vector<8x512xf32> -> vector<8x512xf32>
    %c0_4 = arith.constant 0 : index
    %c0_5 = arith.constant 0 : index
    %5 = vector.load %arg4[%c0_4, %c0_5] : memref<1x512xf32, #tpu.memory_space<vmem>>, vector<1x512xf32>
    %6 = vector.broadcast %5 : vector<1x512xf32> to vector<8x512xf32>
    %7 = arith.addf %4, %6 : vector<8x512xf32>
    %cst_6 = arith.constant 0.000000e+00 : f32
    %8 = vector.broadcast %cst_6 : f32 to vector<8x512xf32>
    %9 = arith.maximumf %7, %8 : vector<8x512xf32>
    %10 = arith.truncf %9 : vector<8x512xf32> to vector<8x512xbf16>
    %c0_7 = arith.constant 0 : index
    %c0_8 = arith.constant 0 : index
    %11 = vector.load %arg5[%c0_7, %c0_8] : memref<512x384xbf16, #tpu.memory_space<vmem>>, vector<512x384xbf16>
    %cst_9 = arith.constant dense<0.000000e+00> : vector<8x384xf32>
    %12 = tpu.matmul %10, %11, %cst_9 {dimension_numbers = #tpu.dot_dimension_numbers<[1], [0], [0], [1], [0, 0, 1, 1], [], []>} : vector<8x512xbf16>, vector<512x384xbf16>, vector<8x384xf32> -> vector<8x384xf32>
    %c0_10 = arith.constant 0 : index
    %c0_11 = arith.constant 0 : index
    %13 = vector.load %arg6[%c0_10, %c0_11] : memref<1x384xf32, #tpu.memory_space<vmem>>, vector<1x384xf32>
    %14 = vector.broadcast %13 : vector<1x384xf32> to vector<8x384xf32>
    %15 = arith.addf %12, %14 : vector<8x384xf32>
    %cst_12 = arith.constant 0.000000e+00 : f32
    %16 = vector.broadcast %cst_12 : f32 to vector<8x384xf32>
    %17 = arith.maximumf %15, %16 : vector<8x384xf32>
    %18 = arith.truncf %17 : vector<8x384xf32> to vector<8x384xbf16>
    %c0_13 = arith.constant 0 : index
    %c0_14 = arith.constant 0 : index
    %19 = vector.load %arg7[%c0_13, %c0_14] : memref<384x128xbf16, #tpu.memory_space<vmem>>, vector<384x128xbf16>
    %cst_15 = arith.constant dense<0.000000e+00> : vector<8x128xf32>
    %20 = tpu.matmul %18, %19, %cst_15 {dimension_numbers = #tpu.dot_dimension_numbers<[1], [0], [0], [1], [0, 0, 1, 1], [], []>} : vector<8x384xbf16>, vector<384x128xbf16>, vector<8x128xf32> -> vector<8x128xf32>
    %c0_16 = arith.constant 0 : index
    %c0_17 = arith.constant 0 : index
    %21 = vector.load %arg8[%c0_16, %c0_17] : memref<1x128xf32, #tpu.memory_space<vmem>>, vector<1x128xf32>
    %22 = vector.broadcast %21 : vector<1x128xf32> to vector<8x128xf32>
    %23 = arith.addf %20, %22 : vector<8x128xf32>
    %24 = math.tanh %23 : vector<8x128xf32>
    %25 = vector.broadcast %0 : f32 to vector<8x128xf32>
    %26 = arith.mulf %25, %24 : vector<8x128xf32>
    %c0_18 = arith.constant 0 : index
    %c0_19 = arith.constant 0 : index
    %27 = vector.load %arg9[%c0_18, %c0_19] : memref<8x128xf32, #tpu.memory_space<vmem>>, vector<8x128xf32>
    tpu.vector_store %arg9[%c0_18, %c0_19], %26 {strides = array<i32>} : memref<8x128xf32, #tpu.memory_space<vmem>>, vector<8x128xf32>,
    return
  }
  func.func @transform_0(%arg0: i32) -> i32 {
    %c0_i32 = arith.constant 0 : i32
    %c0_i32_0 = arith.constant 0 : i32
    return %c0_i32 : i32
  }
  func.func @transform_1(%arg0: i32) -> (i32, i32) {
    %c0_i32 = arith.constant 0 : i32
    %c0_i32_0 = arith.constant 0 : i32
    return %arg0, %c0_i32 : i32, i32
  }
  func.func @transform_2(%arg0: i32) -> (i32, i32) {
    %c0_i32 = arith.constant 0 : i32
    %c0_i32_0 = arith.constant 0 : i32
    %c0_i32_1 = arith.constant 0 : i32
    return %c0_i32, %c0_i32_0 : i32, i32
  }
  func.func @transform_3(%arg0: i32) -> (i32, i32) {
    %c0_i32 = arith.constant 0 : i32
    %c0_i32_0 = arith.constant 0 : i32
    %c0_i32_1 = arith.constant 0 : i32
    return %c0_i32, %c0_i32_0 : i32, i32
  }
  func.func @transform_4(%arg0: i32) -> (i32, i32) {
    %c0_i32 = arith.constant 0 : i32
    %c0_i32_0 = arith.constant 0 : i32
    %c0_i32_1 = arith.constant 0 : i32
    return %c0_i32, %c0_i32_0 : i32, i32
  }
  func.func @transform_5(%arg0: i32) -> (i32, i32) {
    %c0_i32 = arith.constant 0 : i32
    %c0_i32_0 = arith.constant 0 : i32
    %c0_i32_1 = arith.constant 0 : i32
    return %c0_i32, %c0_i32_0 : i32, i32
  }
  func.func @transform_6(%arg0: i32) -> (i32, i32) {
    %c0_i32 = arith.constant 0 : i32
    %c0_i32_0 = arith.constant 0 : i32
    %c0_i32_1 = arith.constant 0 : i32
    return %c0_i32, %c0_i32_0 : i32, i32
  }
  func.func @transform_7(%arg0: i32) -> (i32, i32) {
    %c0_i32 = arith.constant 0 : i32
    %c0_i32_0 = arith.constant 0 : i32
    %c0_i32_1 = arith.constant 0 : i32
    return %c0_i32, %c0_i32_0 : i32, i32
  }
  func.func @transform_8(%arg0: i32) -> (i32, i32) {
    %c0_i32 = arith.constant 0 : i32
    %c0_i32_0 = arith.constant 0 : i32
    return %arg0, %c0_i32 : i32, i32
  }
}

</mosaic_0001>

<bundles_post_ra>
// kernel: tpu_custom_call.1
= control target key start
LH: loop header
LB: loop body
LE: loop exit
PB: predicated region body
PF: predicated region fallthrough
CT: control target
= control target key end

     0   :  { %14 = vsyncpa [#allocation4], 0  ;;  %s2003_s0 = inlined_call_operand.<no memory space> [shape: f32[1], index: 0, kind: input, shape index: {}]   ;;  %s2004_s1 = inlined_call_operand.hbm [shape: f32[8,32], index: 1, kind: input, shape index: {}]   ;;  %s2005_s2 = inlined_call_operand.hbm [shape: bf16[32,512], index: 2, kind: input, shape index: {}]   ;;  %s2006_s3 = inlined_call_operand.vmem [shape: f32[1,512], index: 3, kind: input, shape index: {}]   ;;  %s2007_s4 = inlined_call_operand.hbm [shape: bf16[512,384], index: 4, kind: input, shape index: {}]   ;;  %s2008_s5 = inlined_call_operand.vmem [shape: f32[1,384], index: 5, kind: input, shape index: {}]   ;;  %s2009_s6 = inlined_call_operand.hbm [shape: bf16[384,128], index: 6, kind: input, shape index: {}]   ;;  %s2010_s7 = inlined_call_operand.vmem [shape: f32[1,128], index: 7, kind: input, shape index: {}]   ;;  %s2011_s8 = inlined_call_operand.hbm [shape: f32[8,128], index: 8, kind: output, shape index: {}]  }
   0x1   :  { %15 = vsyncpa [#allocation7], 0 }
   0x2   :  { %16 = vsyncpa [#allocation10], 0 }
   0x3   :  { %17 = vsyncpa [#allocation5], 0  ;;  %s1891_s27 = smov [#allocation6]  }
   0x4   :  { %s35_s28 = sshll.u32 %s1891_s27, 4  ;;  %s36_s28 = int_to_ptr.vmem [resolvable:$true] %s35_s28 }
   0x5   :  { %s1791_s29 = scalar_lea.vmem %s36_s28, 1024  ;;  %p1796_p1 = scmp.lt.s32.totalorder %s36_s28, %s36_s28 }
   0x6   :  { %p1792_p0 = scmp.ne.s32.totalorder %s36_s28, %s1791_s29  ;;  %p1797_p2 = scmp.lt.s32.totalorder %s1791_s29, %s1791_s29 }
   0x8   :  { %p1798_p3 = por %p1797_p2, %p1796_p1 }
   0xa   :  { %p1799_p4 = pnand %p1798_p3, %p1792_p0 }
   0xc   :  { %1802 = shalt.err (!%p1799_p4)
}
   0xd   :  { %s1892_s30 = smov 256   ;;  %s1893_s9 = smov 16  }
   0xe   :  { %41 = dma.hbm_to_vmem [thread:$0]  %s2005_s2, 1024, %s36_s28, [#allocation7], %s1892_s30, %s1892_s30, %s1893_s9  }
   0xf   :  { %s1894_s12 = smov [#allocation3]   ;;  %s1895_s14 = smov [#allocation8]  }
  0x10   :  { %s26_s13 = sshll.u32 %s1894_s12, 4  ;;  %s49_s15 = sshll.u32 %s1895_s14, 4  ;;  %s27_s13 = int_to_ptr.vmem [resolvable:$true] %s26_s13  ;;  %s50_s15 = int_to_ptr.vmem [resolvable:$true] %s49_s15 }
  0x11   :  { %s1811_s16 = scalar_lea.vmem %s27_s13, 128  ;;  %p1816_p6 = scmp.lt.s32.totalorder %s27_s13, %s27_s13 }
  0x12   :  { %p1812_p5 = scmp.ne.s32.totalorder %s27_s13, %s1811_s16  ;;  %p1817_p7 = scmp.lt.s32.totalorder %s1811_s16, %s1811_s16 }
  0x14   :  { %p1818_p8 = por %p1817_p7, %p1816_p6 }
  0x16   :  { %p1819_p9 = pnand %p1818_p8, %p1812_p5 }
  0x18   :  { %1822 = shalt.err (!%p1819_p9)
}
  0x19   :  { %29 = dma.hbm_to_vmem [thread:$0]  %s2004_s1, 128, %s27_s13, [#allocation4]  }
  0x1a   :  { %s1831_s19 = scalar_lea.vmem %s50_s15, 12288  ;;  %p1836_p11 = scmp.lt.s32.totalorder %s50_s15, %s50_s15 }
  0x1b   :  { %p1832_p10 = scmp.ne.s32.totalorder %s50_s15, %s1831_s19  ;;  %p1837_p12 = scmp.lt.s32.totalorder %s1831_s19, %s1831_s19 }
  0x1d   :  { %p1838_p13 = por %p1837_p12, %p1836_p11 }
  0x1f   :  { %p1839_p0 = pnand %p1838_p13, %p1832_p10 }
  0x21   :  { %1842 = shalt.err (!%p1839_p0)
}
  0x22   :  { %s1896_s2 = smov 192   ;;  %s1897_s20 = smov 12  }
  0x23   :  { %55 = dma.hbm_to_vmem [thread:$0]  %s2007_s4, 12288, %s50_s15, [#allocation7], %s1896_s2, %s1896_s2, %s1897_s20  }
  0x24   :  { %s1898_s23 = smov [#allocation9]  }
  0x25   :  { %s63_s24 = sshll.u32 %s1898_s23, 4  ;;  %s64_s24 = int_to_ptr.vmem [resolvable:$true] %s63_s24 }
  0x26   :  { %s1851_s25 = scalar_lea.vmem %s64_s24, 3072  ;;  %p1856_p2 = scmp.lt.s32.totalorder %s64_s24, %s64_s24 }
  0x27   :  { %p1852_p1 = scmp.ne.s32.totalorder %s64_s24, %s1851_s25  ;;  %p1857_p3 = scmp.lt.s32.totalorder %s1851_s25, %s1851_s25 }
  0x29   :  { %p1858_p4 = por %p1857_p3, %p1856_p2 }
  0x2b   :  { %p1859_p5 = pnand %p1858_p4, %p1852_p1 }
  0x2d   :  { %1862 = shalt.err (!%p1859_p5)
}
  0x2e   :  { %s1899_s1 = smov 64   ;;  %s1900_s26 = smov 4  }
  0x2f   :  { %69 = dma.hbm_to_vmem [thread:$0]  %s2009_s6, 3072, %s64_s24, [#allocation10], %s1899_s1, %s1899_s1, %s1900_s26  }
  0x30   :  { %1883 = dma.done.wait [#allocation4], 128  }
  0x31   :  { %1884 = vsyncadd [#allocation4], 4294967168 }
  0x32   :  { %1885 = dma.done.wait [#allocation7], 13312  }
  0x33   :  { %1886 = vsyncadd [#allocation7], 4294953984 }
  0x34   :  { %1887 = dma.done.wait [#allocation10], 3072  }
  0x35   :  { %1888 = vsyncadd [#allocation10], 4294964224  ;;  %v1901_v0 = vmov 0   ;;  %v1617_v1 = vld [vmem:[#allocation6 + $0x24] ss:$16 sps:$4 sm:$0xff]   ;;  %v86_v9 = vld [vmem:[#allocation3] sm:$0xff] }
  0x36   :  { %194 = vmatprep.mubr.bf16.mxu0 %v1901_v0  ;;  %235 = vmatprep.mubr.bf16.mxu1 %v1901_v0  ;;  %v1619_v2 = vld [vmem:[#allocation6 + $0x2c] ss:$16 sps:$4 sm:$0xff]   ;;  %v1621_v3 = vld [vmem:[#allocation6 + $0x20] ss:$16 sps:$4 sm:$0xff]   ;;  %v1622_v4 = vld [vmem:[#allocation6 + $0x28] ss:$16 sps:$4 sm:$0xff]   ;;  %v87_v12 = vpack.c.bf16 %v86_v9, %v86_v9 }
  0x37   :  { %174 = vmatprep.subr.bf16.mxu0 %v1617_v1  ;;  %215 = vmatprep.subr.bf16.mxu1 %v1619_v2  ;;  %v1623_v5 = vld [vmem:[#allocation6 + $0x4] ss:$16 sps:$4 sm:$0xff]   ;;  %v1625_v6 = vld [vmem:[#allocation6 + $0xc] ss:$16 sps:$4 sm:$0xff]   ;;  %v1627_v7 = vld [vmem:[#allocation6] ss:$16 sps:$4 sm:$0xff]  }
  0x38   :  { %175 = vmatpush1.bf16.msra.mxu0 %v1621_v3  ;;  %216 = vmatpush1.bf16.msra.mxu1 %v1622_v4  ;;  %v1628_v8 = vld [vmem:[#allocation6 + $0x8] ss:$16 sps:$4 sm:$0xff]   ;;  %vm158_vm0 = vcmask 261120   ;;  %v1637_v15 = vld [vmem:[#allocation8 + $0x94] ss:$12 sps:$4 sm:$0xff]   ;;  %vm1903_vm1 = vmmov 0  }
  0x39   :  { %176 = vmatprep.subr.bf16.mxu0 %v1623_v5  ;;  %217 = vmatprep.subr.bf16.mxu1 %v1625_v6  ;;  %v1629_v10 = vld [vmem:[#allocation8 + $0xa8] ss:$12 sps:$4 sm:$0xff]   ;;  %v1631_v11 = vld [vmem:[#allocation8 + $0xac] ss:$12 sps:$4 sm:$0xff]   ;;  %v1635_v17 = vld [vmem:[#allocation8 + $0x90] ss:$12 sps:$4 sm:$0xff]  }
  0x3a   :  { %v1632_v13 = vld [vmem:[#allocation8 + $0x228] ss:$12 sps:$4 sm:$0xff]   ;;  %v1634_v14 = vld [vmem:[#allocation8 + $0x22c] ss:$12 sps:$4 sm:$0xff]   ;;  %v1638_v18 = vld [vmem:[#allocation8 + $0x210] ss:$12 sps:$4 sm:$0xff]  }
  0x3b   :  { %v1640_v16 = vld [vmem:[#allocation8 + $0x214] ss:$12 sps:$4 sm:$0xff]   ;;  %v1643_v19 = vld [vmem:[#allocation8 + $0x7c] ss:$12 sps:$4 sm:$0xff]   ;;  %v1641_v21 = vld [vmem:[#allocation8 + $0x78] ss:$12 sps:$4 sm:$0xff]  }
  0x3c   :  { %177 = vmatpush1.bf16.msra.mxu0 %v1627_v7  ;;  %218 = vmatpush1.bf16.msra.mxu1 %v1628_v8  ;;  %v1646_v20 = vld [vmem:[#allocation8 + $0x1fc] ss:$12 sps:$4 sm:$0xff]   ;;  %v1644_v22 = vld [vmem:[#allocation8 + $0x1f8] ss:$12 sps:$4 sm:$0xff]   ;;  %v1647_v25 = vld [vmem:[#allocation8 + $0x60] ss:$12 sps:$4 sm:$0xff]  }
  0x3d   :  { %909 = vmatprep.subr.bf16.mxu0 %v1631_v11  ;;  %950 = vmatprep.subr.bf16.mxu1 %v1634_v14  ;;  %v1649_v23 = vld [vmem:[#allocation8 + $0x64] ss:$12 sps:$4 sm:$0xff]   ;;  %v1650_v26 = vld [vmem:[#allocation8 + $0x1e0] ss:$12 sps:$4 sm:$0xff]   ;;  %v1653_v29 = vld [vmem:[#allocation8 + $0x48] ss:$12 sps:$4 sm:$0xff]  }
  0x3e   :  { %v1652_v24 = vld [vmem:[#allocation8 + $0x1e4] ss:$12 sps:$4 sm:$0xff]   ;;  %v1655_v27 = vld [vmem:[#allocation8 + $0x4c] ss:$12 sps:$4 sm:$0xff]   ;;  %v1656_v30 = vld [vmem:[#allocation8 + $0x1c8] ss:$12 sps:$4 sm:$0xff]  }
  0x3f   :  { %1385 = vmatmul.mubr.msk.bf16.vlgmr.msra.gmra.mxu0 %vm158_vm0, %v87_v12  ;;  %1386 = vmatmul.mubr.msk.bf16.vlgmr.msra.gmra.mxu1 %vm158_vm0, %v87_v12  ;;  %v1658_v28 = vld [vmem:[#allocation8 + $0x1cc] ss:$12 sps:$4 sm:$0xff]   ;;  %v1661_v31 = vld [vmem:[#allocation8 + $0x34] ss:$12 sps:$4 sm:$0xff]   ;;  %v1659_v33 = vld [vmem:[#allocation8 + $0x30] ss:$12 sps:$4 sm:$0xff]  }
  0x40   :  { %910 = vmatpush1.bf16.msra.mxu0 %v1629_v10  ;;  %951 = vmatpush1.bf16.msra.mxu1 %v1632_v13  ;;  %v1664_v32 = vld [vmem:[#allocation8 + $0x1b4] ss:$12 sps:$4 sm:$0xff]   ;;  %v1662_v34 = vld [vmem:[#allocation8 + $0x1b0] ss:$12 sps:$4 sm:$0xff]   ;;  %v1665_v37 = vld [vmem:[#allocation8 + $0x18] ss:$12 sps:$4 sm:$0xff]   ;;  %v98_v13 = vlaneseq }
  0x41   :  { %911 = vmatprep.subr.bf16.mxu0 %v1637_v15  ;;  %952 = vmatprep.subr.bf16.mxu1 %v1640_v16  ;;  %v1667_v35 = vld [vmem:[#allocation8 + $0x1c] ss:$12 sps:$4 sm:$0xff]   ;;  %v1668_v38 = vld [vmem:[#allocation8 + $0x198] ss:$12 sps:$4 sm:$0xff]   ;;  %v1671_v41 = vld [vmem:[#allocation8] ss:$12 sps:$4 sm:$0xff]  }
  0x42   :  { %v1670_v36 = vld [vmem:[#allocation8 + $0x19c] ss:$12 sps:$4 sm:$0xff]   ;;  %v1673_v39 = vld [vmem:[#allocation8 + $0x4] ss:$12 sps:$4 sm:$0xff]   ;;  %v1674_v42 = vld [vmem:[#allocation8 + $0x180] ss:$12 sps:$4 sm:$0xff]  }
  0x43   :  { %v1676_v40 = vld [vmem:[#allocation8 + $0x184] ss:$12 sps:$4 sm:$0xff]   ;;  %v1679_v43 = vld [vmem:[#allocation8 + $0x16c] ss:$12 sps:$4 sm:$0xff]   ;;  %v1677_v45 = vld [vmem:[#allocation8 + $0x168] ss:$12 sps:$4 sm:$0xff]  }
  0x44   :  { %912 = vmatpush1.bf16.msra.mxu0 %v1635_v17  ;;  %953 = vmatpush1.bf16.msra.mxu1 %v1638_v18  ;;  %v1682_v44 = vld [vmem:[#allocation8 + $0x2ec] ss:$12 sps:$4 sm:$0xff]   ;;  %v1680_v46 = vld [vmem:[#allocation8 + $0x2e8] ss:$12 sps:$4 sm:$0xff]   ;;  %v1683_v49 = vld [vmem:[#allocation8 + $0x150] ss:$12 sps:$4 sm:$0xff]  }
  0x45   :  { %913 = vmatprep.subr.bf16.mxu0 %v1643_v19  ;;  %954 = vmatprep.subr.bf16.mxu1 %v1646_v20  ;;  %v1685_v47 = vld [vmem:[#allocation8 + $0x154] ss:$12 sps:$4 sm:$0xff]   ;;  %v1686_v50 = vld [vmem:[#allocation8 + $0x2d0] ss:$12 sps:$4 sm:$0xff]   ;;  %v1689_v53 = vld [vmem:[#allocation8 + $0x138] ss:$12 sps:$4 sm:$0xff]  }
  0x46   :  { %v1688_v48 = vld [vmem:[#allocation8 + $0x2d4] ss:$12 sps:$4 sm:$0xff]   ;;  %v1691_v51 = vld [vmem:[#allocation8 + $0x13c] ss:$12 sps:$4 sm:$0xff]   ;;  %v1692_v54 = vld [vmem:[#allocation8 + $0x2b8] ss:$12 sps:$4 sm:$0xff]  }
  0x47   :  { %v1694_v52 = vld [vmem:[#allocation8 + $0x2bc] ss:$12 sps:$4 sm:$0xff]   ;;  %v1697_v55 = vld [vmem:[#allocation8 + $0x124] ss:$12 sps:$4 sm:$0xff]   ;;  %v1695_v57 = vld [vmem:[#allocation8 + $0x120] ss:$12 sps:$4 sm:$0xff]  }
  0x48   :  { %914 = vmatpush1.bf16.msra.mxu0 %v1641_v21  ;;  %955 = vmatpush1.bf16.msra.mxu1 %v1644_v22  ;;  %v1700_v56 = vld [vmem:[#allocation8 + $0x2a4] ss:$12 sps:$4 sm:$0xff]   ;;  %v1698_v58 = vld [vmem:[#allocation8 + $0x2a0] ss:$12 sps:$4 sm:$0xff]   ;;  %v1701_v61 = vld [vmem:[#allocation8 + $0x108] ss:$12 sps:$4 sm:$0xff]  }
  0x49   :  { %915 = vmatprep.subr.bf16.mxu0 %v1649_v23  ;;  %956 = vmatprep.subr.bf16.mxu1 %v1652_v24  ;;  %v1703_v59 = vld [vmem:[#allocation8 + $0x10c] ss:$12 sps:$4 sm:$0xff]   ;;  %v1704_v62 = vld [vmem:[#allocation8 + $0x288] ss:$12 sps:$4 sm:$0xff]   ;;  %v1707_v1 = vld [vmem:[#allocation8 + $0xf0] ss:$12 sps:$4 sm:$0xff]  }
  0x4a   :  { %v1706_v60 = vld [vmem:[#allocation8 + $0x28c] ss:$12 sps:$4 sm:$0xff]   ;;  %v1709_v63 = vld [vmem:[#allocation8 + $0xf4] ss:$12 sps:$4 sm:$0xff]   ;;  %v1710_v2 = vld [vmem:[#allocation8 + $0x270] ss:$12 sps:$4 sm:$0xff]  }
  0x4b   :  { %v1712_v0 = vld [vmem:[#allocation8 + $0x274] ss:$12 sps:$4 sm:$0xff]   ;;  %v1715_v3 = vld [vmem:[#allocation8 + $0xdc] ss:$12 sps:$4 sm:$0xff]   ;;  %v1713_v5 = vld [vmem:[#allocation8 + $0xd8] ss:$12 sps:$4 sm:$0xff]  }
  0x4c   :  { %916 = vmatpush1.bf16.msra.mxu0 %v1647_v25  ;;  %957 = vmatpush1.bf16.msra.mxu1 %v1650_v26  ;;  %v1718_v4 = vld [vmem:[#allocation8 + $0x25c] ss:$12 sps:$4 sm:$0xff]   ;;  %v1716_v6 = vld [vmem:[#allocation8 + $0x258] ss:$12 sps:$4 sm:$0xff]   ;;  %v1719_v9 = vld [vmem:[#allocation8 + $0xc0] ss:$12 sps:$4 sm:$0xff]  }
  0x4d   :  { %917 = vmatprep.subr.bf16.mxu0 %v1655_v27  ;;  %958 = vmatprep.subr.bf16.mxu1 %v1658_v28  ;;  %v1721_v7 = vld [vmem:[#allocation8 + $0xc4] ss:$12 sps:$4 sm:$0xff]   ;;  %v1722_v10 = vld [vmem:[#allocation8 + $0x240] ss:$12 sps:$4 sm:$0xff]   ;;  %v1962_v14 = vshrl.u32 %v98_v13, 7  ;;  %s1904_s11 = smov [#allocation11]  }
  0x4e   :  { %v1724_v8 = vld [vmem:[#allocation8 + $0x244] ss:$12 sps:$4 sm:$0xff]   ;;  %v96_v17 = vld [vmem:[%s2006_s3] sm:$0xf]  ;;  %s1366_s12 = sshll.u32 %s1904_s11, 4  ;;  %s1367_s12 = int_to_ptr.vmem [resolvable:$true] %s1366_s12 }
  0x4f   :  { %v1725_v11 = vld [vmem:[#allocation8 + $0x170] ss:$12 sps:$4 sm:$0xff]   ;;  %v100_v15 = vsub.s32 0, %v1962_v14  ;;  %v108_v16 = vsub.s32 2, %v1962_v14  ;;  %v104_v18 = vsub.s32 1, %v1962_v14  ;;  %v112_v19 = vsub.s32 3, %v1962_v14  ;;  %p1868_p7 = scmp.lt.s32.totalorder %s1367_s12, %s1367_s12 }
  0x50   :  { %918 = vmatpush1.bf16.msra.mxu0 %v1653_v29  ;;  %959 = vmatpush1.bf16.msra.mxu1 %v1656_v30  ;;  %v1726_v12 = vld [vmem:[#allocation8 + $0x2f0] ss:$12 sps:$4 sm:$0xff]   ;;  %v1483_v14 = vld [vmem:[%s2010_s7] ss:$0 sm:$0xff]  ;;  %s1863_s13 = scalar_lea.vmem %s1367_s12, 128 }
  0x51   :  { %919 = vmatprep.subr.bf16.mxu0 %v1661_v31  ;;  %960 = vmatprep.subr.bf16.mxu1 %v1664_v32  ;;  %v101_v20 = vrot.slane %v96_v17, %v100_v15  ;;  %v109_v21 = vrot.slane %v96_v17, %v108_v16  ;;  %v105_v22 = vrot.slane %v96_v17, %v104_v18  ;;  %v1760_v13 = vld [vmem:[#allocation9 + $0x30] sm:$0xff]   ;;  %p1864_p6 = scmp.ne.s32.totalorder %s1367_s12, %s1863_s13  ;;  %p1869_p8 = scmp.lt.s32.totalorder %s1863_s13, %s1863_s13 }
  0x52   :  { %v113_v23 = vrot.slane %v96_v17, %v112_v19  ;;  %v1761_v17 = vld [vmem:[#allocation9 + $0x68] sm:$0xff]  }
  0x53   :  { %v1762_v19 = vld [vmem:[#allocation9 + $0x28] sm:$0xff]   ;;  %p1870_p9 = por %p1869_p8, %p1868_p7 }
  0x54   :  { %920 = vmatpush1.bf16.msra.mxu0 %v1659_v33  ;;  %961 = vmatpush1.bf16.msra.mxu1 %v1662_v34 }
  0x55   :  { %921 = vmatprep.subr.bf16.mxu0 %v1667_v35  ;;  %962 = vmatprep.subr.bf16.mxu1 %v1670_v36  ;;  %p1871_p10 = pnand %p1870_p9, %p1864_p6 }
  0x58   :  { %922 = vmatpush1.bf16.msra.mxu0 %v1665_v37  ;;  %963 = vmatpush1.bf16.msra.mxu1 %v1668_v38 }
  0x59   :  { %923 = vmatprep.subr.bf16.mxu0 %v1673_v39  ;;  %964 = vmatprep.subr.bf16.mxu1 %v1676_v40 }
  0x5c   :  { %924 = vmatpush1.bf16.msra.mxu0 %v1671_v41  ;;  %965 = vmatpush1.bf16.msra.mxu1 %v1674_v42 }
  0x5d   :  { %925 = vmatprep.subr.bf16.mxu0 %v1679_v43  ;;  %966 = vmatprep.subr.bf16.mxu1 %v1682_v44  ;;  %v1727_v43 = vld [vmem:[#allocation8 + $0xb0] ss:$12 sps:$4 sm:$0xff]  }
  0x5e   :  { %v1728_v44 = vld [vmem:[#allocation8 + $0x230] ss:$12 sps:$4 sm:$0xff]  }
  0x60   :  { %926 = vmatpush2.bf16.msra.mxu0 %v1677_v45  ;;  %967 = vmatpush2.bf16.msra.mxu1 %v1680_v46  ;;  %v1729_v46 = vld [vmem:[#allocation8 + $0x158] ss:$12 sps:$4 sm:$0xff]  }
  0x61   :  { %927 = vmatprep.subr.bf16.mxu0 %v1685_v47  ;;  %968 = vmatprep.subr.bf16.mxu1 %v1688_v48  ;;  %v1730_v47 = vld [vmem:[#allocation8 + $0x2d8] ss:$12 sps:$4 sm:$0xff]  }
  0x62   :  { %v1731_v48 = vld [vmem:[#allocation8 + $0x98] ss:$12 sps:$4 sm:$0xff]  }
  0x64   :  { %928 = vmatpush2.bf16.msra.mxu0 %v1683_v49  ;;  %969 = vmatpush2.bf16.msra.mxu1 %v1686_v50  ;;  %v1732_v49 = vld [vmem:[#allocation8 + $0x218] ss:$12 sps:$4 sm:$0xff]   ;;  %v1733_v50 = vld [vmem:[#allocation8 + $0x140] ss:$12 sps:$4 sm:$0xff]  }
  0x65   :  { %929 = vmatprep.subr.bf16.mxu0 %v1691_v51  ;;  %970 = vmatprep.subr.bf16.mxu1 %v1694_v52  ;;  %v1734_v51 = vld [vmem:[#allocation8 + $0x2c0] ss:$12 sps:$4 sm:$0xff]  }
  0x66   :  { %v1735_v52 = vld [vmem:[#allocation8 + $0x80] ss:$12 sps:$4 sm:$0xff]  }
  0x68   :  { %930 = vmatpush2.bf16.msra.mxu0 %v1689_v53  ;;  %971 = vmatpush2.bf16.msra.mxu1 %v1692_v54  ;;  %v1736_v53 = vld [vmem:[#allocation8 + $0x200] ss:$12 sps:$4 sm:$0xff]   ;;  %v1737_v54 = vld [vmem:[#allocation8 + $0x128] ss:$12 sps:$4 sm:$0xff]  }
  0x69   :  { %931 = vmatprep.subr.bf16.mxu0 %v1697_v55  ;;  %972 = vmatprep.subr.bf16.mxu1 %v1700_v56  ;;  %v1738_v55 = vld [vmem:[#allocation8 + $0x2a8] ss:$12 sps:$4 sm:$0xff]  }
  0x6a   :  { %v1739_v56 = vld [vmem:[#allocation8 + $0x68] ss:$12 sps:$4 sm:$0xff]  }
  0x6c   :  { %932 = vmatpush2.bf16.msra.mxu0 %v1695_v57  ;;  %973 = vmatpush2.bf16.msra.mxu1 %v1698_v58  ;;  %v1740_v57 = vld [vmem:[#allocation8 + $0x1e8] ss:$12 sps:$4 sm:$0xff]   ;;  %v1741_v58 = vld [vmem:[#allocation8 + $0x110] ss:$12 sps:$4 sm:$0xff]  }
  0x6d   :  { %933 = vmatprep.subr.bf16.mxu0 %v1703_v59  ;;  %974 = vmatprep.subr.bf16.mxu1 %v1706_v60  ;;  %v1742_v59 = vld [vmem:[#allocation8 + $0x290] ss:$12 sps:$4 sm:$0xff]  }
  0x6e   :  { %v1743_v60 = vld [vmem:[#allocation8 + $0x50] ss:$12 sps:$4 sm:$0xff]  }
  0x70   :  { %934 = vmatpush2.bf16.msra.mxu0 %v1701_v61  ;;  %975 = vmatpush2.bf16.msra.mxu1 %v1704_v62  ;;  %v1744_v61 = vld [vmem:[#allocation8 + $0x1d0] ss:$12 sps:$4 sm:$0xff]   ;;  %v1745_v62 = vld [vmem:[#allocation8 + $0xf8] ss:$12 sps:$4 sm:$0xff]  }
  0x71   :  { %935 = vmatprep.subr.bf16.mxu0 %v1709_v63  ;;  %976 = vmatprep.subr.bf16.mxu1 %v1712_v0  ;;  %v1746_v63 = vld [vmem:[#allocation8 + $0x278] ss:$12 sps:$4 sm:$0xff]  }
  0x72   :  { %v1747_v0 = vld [vmem:[#allocation8 + $0x38] ss:$12 sps:$4 sm:$0xff]  }
  0x74   :  { %936 = vmatpush2.bf16.msra.mxu0 %v1707_v1  ;;  %977 = vmatpush2.bf16.msra.mxu1 %v1710_v2  ;;  %v1748_v1 = vld [vmem:[#allocation8 + $0x1b8] ss:$12 sps:$4 sm:$0xff]   ;;  %v1749_v2 = vld [vmem:[#allocation8 + $0xe0] ss:$12 sps:$4 sm:$0xff]  }
  0x75   :  { %937 = vmatprep.subr.bf16.mxu0 %v1715_v3  ;;  %978 = vmatprep.subr.bf16.mxu1 %v1718_v4  ;;  %v1750_v3 = vld [vmem:[#allocation8 + $0x260] ss:$12 sps:$4 sm:$0xff]  }
  0x76   :  { %v1751_v4 = vld [vmem:[#allocation8 + $0x20] ss:$12 sps:$4 sm:$0xff]  }
  0x78   :  { %938 = vmatpush2.bf16.msra.mxu0 %v1713_v5  ;;  %979 = vmatpush2.bf16.msra.mxu1 %v1716_v6  ;;  %v1752_v5 = vld [vmem:[#allocation8 + $0x1a0] ss:$12 sps:$4 sm:$0xff]   ;;  %v1753_v6 = vld [vmem:[#allocation8 + $0xc8] ss:$12 sps:$4 sm:$0xff]  }
  0x79   :  { %939 = vmatprep.subr.bf16.mxu0 %v1721_v7  ;;  %980 = vmatprep.subr.bf16.mxu1 %v1724_v8  ;;  %v1754_v7 = vld [vmem:[#allocation8 + $0x248] ss:$12 sps:$4 sm:$0xff]  }
  0x7a   :  { %v1755_v8 = vld [vmem:[#allocation8 + $0x8] ss:$12 sps:$4 sm:$0xff]  }
  0x7c   :  { %940 = vmatpush2.bf16.msra.mxu0 %v1719_v9  ;;  %981 = vmatpush2.bf16.msra.mxu1 %v1722_v10  ;;  %v1756_v9 = vld [vmem:[#allocation8 + $0x188] ss:$12 sps:$4 sm:$0xff]   ;;  %v1757_v10 = vld [vmem:[#allocation9 + $0x78] sm:$0xff]  }
  0x7d   :  { %1508 = vmatprep.subr.bf16.mxu0 %v1725_v11  ;;  %1530 = vmatprep.subr.bf16.mxu1 %v1726_v12  ;;  %v1758_v11 = vld [vmem:[#allocation9 + $0x38] sm:$0xff]   ;;  %v1759_v12 = vld [vmem:[#allocation9 + $0x70] sm:$0xff]  }
  0xff   :  { %v196_v24 = vpop.f32.mrf.mxu0  ;;  %v237_v25 = vpop.f32.mrf.mxu1 }
 0x100   :  { %v197_v26 = vadd.f32 %v196_v24, %v101_v20  ;;  %v238_v27 = vadd.f32 %v237_v25, %v109_v21  ;;  %v1763_v20 = vld [vmem:[#allocation9 + $0x60] sm:$0xff]   ;;  %v1767_v24 = vld [vmem:[#allocation9 + $0x50] sm:$0xff]  }
 0x101   :  { %v198_v28 = vpop.f32.mrf.mxu0  ;;  %v239_v29 = vpop.f32.mrf.mxu1  ;;  %v1764_v21 = vld [vmem:[#allocation9 + $0x20] sm:$0xff]   ;;  %v1768_v25 = vld [vmem:[#allocation9 + $0x10] sm:$0xff]  }
 0x102   :  { %v246_v30 = vmax.f32 %v238_v27, 0.0  ;;  %v199_v31 = vadd.f32 %v198_v28, %v105_v22  ;;  %v240_v32 = vadd.f32 %v239_v29, %v113_v23  ;;  %v244_v33 = vmax.f32 %v197_v26, 0.0  ;;  %v1765_v22 = vld [vmem:[#allocation9 + $0x58] sm:$0xff]   ;;  %v1769_v26 = vld [vmem:[#allocation9 + $0x48] sm:$0xff]   ;;  %v1771_v28 = vld [vmem:[#allocation9 + $0x40] sm:$0xff]  }
 0x103   :  { %v200_v34 = vpop.f32.mrf.mxu0  ;;  %v241_v35 = vpop.f32.mrf.mxu1  ;;  %v1766_v23 = vld [vmem:[#allocation9 + $0x18] sm:$0xff]   ;;  %v1770_v27 = vld [vmem:[#allocation9 + $0x8] sm:$0xff]   ;;  %v1772_v29 = vld [vmem:[#allocation9] sm:$0xff]  }
 0x104   :  { %v245_v36 = vmax.f32 %v199_v31, 0.0  ;;  %v247_v37 = vmax.f32 %v240_v32, 0.0  ;;  %v1977_v38 = vpack.c.bf16 %v246_v30, %v246_v30  ;;  %v1979_v45 = vpack.c.bf16 %v244_v33, %v244_v33  ;;  %v1773_v30 = vld [vmem:[#allocation9 + $0xb8] sm:$0xff]   ;;  %v1774_v32 = vld [vmem:[#allocation9 + $0xb0] sm:$0xff]   ;;  %v1775_v33 = vld [vmem:[#allocation9 + $0xa8] sm:$0xff]  }
 0x105   :  { %v201_v39 = vpop.f32.mrf.mxu0  ;;  %v242_v40 = vpop.f32.mrf.mxu1  ;;  %v1902_v31 = vmov 0.0   ;;  %v1776_v34 = vld [vmem:[#allocation9 + $0xa0] sm:$0xff]   ;;  %v1777_v35 = vld [vmem:[#allocation9 + $0x98] sm:$0xff]  }
 0x106   :  { %v249_v41 = vpack.c.bf16 %v245_v36, %v245_v36  ;;  %v251_v42 = vpack.c.bf16 %v247_v37, %v247_v37  ;;  %v1778_v36 = vld [vmem:[#allocation9 + $0x90] sm:$0xff]   ;;  %v1779_v37 = vld [vmem:[#allocation9 + $0x88] sm:$0xff]   ;;  %v380_v39 = vld [vmem:[%s2008_s5] sm:$0x7] }
 0x107   :  { %v385_v40 = vrot.slane %v380_v39, %v100_v15 }
 0x108   :  { %941 = vmatprep.mubr.bf16.mxu0 %v249_v41  ;;  %982 = vmatprep.mubr.bf16.mxu1 %v251_v42 }
 0x109   :  { %942 = vmatmul.mubr.bf16.vlgmr.msra.gmra.mxu0 %v1979_v45  ;;  %983 = vmatmul.mubr.bf16.vlgmr.msra.gmra.mxu1 %v1977_v38 }
 0x10a   :  { %1509 = vmatpush3.bf16.msra.mxu0 %v1727_v43  ;;  %1531 = vmatpush3.bf16.msra.mxu1 %v1728_v44 }
 0x10b   :  { %1023 = vmatprep.mubr.bf16.mxu0 %v249_v41  ;;  %1063 = vmatprep.mubr.bf16.mxu1 %v251_v42  ;;  %v389_v41 = vrot.slane %v380_v39, %v104_v18 }
 0x10c   :  { %1510 = vmatprep.subr.bf16.mxu0 %v1729_v46  ;;  %1532 = vmatprep.subr.bf16.mxu1 %v1730_v47 }
 0x10e   :  { %1511 = vmatpush3.bf16.msra.mxu0 %v1731_v48  ;;  %1533 = vmatpush3.bf16.msra.mxu1 %v1732_v49 }
 0x10f   :  { %1512 = vmatprep.subr.bf16.mxu0 %v1733_v50  ;;  %1534 = vmatprep.subr.bf16.mxu1 %v1734_v51 }
 0x112   :  { %1513 = vmatpush3.bf16.msra.mxu0 %v1735_v52  ;;  %1535 = vmatpush3.bf16.msra.mxu1 %v1736_v53 }
 0x113   :  { %1514 = vmatprep.subr.bf16.mxu0 %v1737_v54  ;;  %1536 = vmatprep.subr.bf16.mxu1 %v1738_v55 }
 0x116   :  { %1515 = vmatpush3.bf16.msra.mxu0 %v1739_v56  ;;  %1537 = vmatpush3.bf16.msra.mxu1 %v1740_v57 }
 0x117   :  { %1516 = vmatprep.subr.bf16.mxu0 %v1741_v58  ;;  %1538 = vmatprep.subr.bf16.mxu1 %v1742_v59  ;;  %v393_v58 = vrot.slane %v380_v39, %v108_v16 }
 0x11a   :  { %1517 = vmatpush3.bf16.msra.mxu0 %v1743_v60  ;;  %1539 = vmatpush3.bf16.msra.mxu1 %v1744_v61 }
 0x11b   :  { %1518 = vmatprep.subr.bf16.mxu0 %v1745_v62  ;;  %1540 = vmatprep.subr.bf16.mxu1 %v1746_v63 }
 0x11e   :  { %1519 = vmatpush3.bf16.msra.mxu0 %v1747_v0  ;;  %1541 = vmatpush3.bf16.msra.mxu1 %v1748_v1 }
 0x11f   :  { %1520 = vmatprep.subr.bf16.mxu0 %v1749_v2  ;;  %1542 = vmatprep.subr.bf16.mxu1 %v1750_v3 }
 0x122   :  { %1521 = vmatpush3.bf16.msra.mxu0 %v1751_v4  ;;  %1543 = vmatpush3.bf16.msra.mxu1 %v1752_v5 }
 0x123   :  { %1522 = vmatprep.subr.bf16.mxu0 %v1753_v6  ;;  %1544 = vmatprep.subr.bf16.mxu1 %v1754_v7 }
 0x126   :  { %1523 = vmatpush3.bf16.msra.mxu0 %v1755_v8  ;;  %1545 = vmatpush3.bf16.msra.mxu1 %v1756_v9 }
 0x127   :  { %1552 = vmatprep.subr.bf16.mxu0 %v1757_v10  ;;  %1583 = vmatprep.subr.bf16.mxu1 %v1902_v31 }
 0x129   :  { %1024 = vmatmul.mubr.bf16.vlgmr.msra.gmra.mxu0 %v1979_v45  ;;  %1064 = vmatmul.mubr.bf16.vlgmr.msra.gmra.mxu1 %v1977_v38  ;;  %v1780_v38 = vld [vmem:[#allocation9 + $0x80] sm:$0xff]  }
 0x12a   :  { %1553 = vmatpush3.bf16.msra.mxu0 %v1758_v11  ;;  %1584 = vmatpush3.bf16.msra.mxu1 %v1773_v30 }
 0x12b   :  { %1554 = vmatprep.subr.bf16.mxu0 %v1759_v12  ;;  %1585 = vmatprep.subr.bf16.mxu1 %v1902_v31 }
 0x12c   :  { %1599 = vmatprep.mubr.msk.bf16.mxu1 %vm1903_vm1, %v1902_v31 }
 0x12e   :  { %1555 = vmatpush3.bf16.msra.mxu0 %v1760_v13  ;;  %1586 = vmatpush3.bf16.msra.mxu1 %v1774_v32 }
 0x12f   :  { %1556 = vmatprep.subr.bf16.mxu0 %v1761_v17  ;;  %1587 = vmatprep.subr.bf16.mxu1 %v1902_v31 }
 0x132   :  { %1557 = vmatpush3.bf16.msra.mxu0 %v1762_v19  ;;  %1588 = vmatpush3.bf16.msra.mxu1 %v1775_v33 }
 0x133   :  { %1558 = vmatprep.subr.bf16.mxu0 %v1763_v20  ;;  %1589 = vmatprep.subr.bf16.mxu1 %v1902_v31 }
 0x136   :  { %1559 = vmatpush3.bf16.msra.mxu0 %v1764_v21  ;;  %1590 = vmatpush3.bf16.msra.mxu1 %v1776_v34  ;;  %v1357_v21 = vstv %s2003_s0 }
 0x137   :  { %1560 = vmatprep.subr.bf16.mxu0 %v1765_v22  ;;  %1591 = vmatprep.subr.bf16.mxu1 %v1902_v31 }
 0x13a   :  { %1561 = vmatpush3.bf16.msra.mxu0 %v1766_v23  ;;  %1592 = vmatpush3.bf16.msra.mxu1 %v1777_v35 }
 0x13b   :  { %1562 = vmatprep.subr.bf16.mxu0 %v1767_v24  ;;  %1593 = vmatprep.subr.bf16.mxu1 %v1902_v31 }
 0x13e   :  { %1563 = vmatpush3.bf16.msra.mxu0 %v1768_v25  ;;  %1594 = vmatpush3.bf16.msra.mxu1 %v1778_v36 }
 0x13f   :  { %1564 = vmatprep.subr.bf16.mxu0 %v1769_v26  ;;  %1595 = vmatprep.subr.bf16.mxu1 %v1902_v31 }
 0x142   :  { %1565 = vmatpush3.bf16.msra.mxu0 %v1770_v27  ;;  %1596 = vmatpush3.bf16.msra.mxu1 %v1779_v37 }
 0x143   :  { %1566 = vmatprep.subr.bf16.mxu0 %v1771_v28  ;;  %1597 = vmatprep.subr.bf16.mxu1 %v1902_v31 }
 0x146   :  { %1567 = vmatpush3.bf16.msra.mxu0 %v1772_v29  ;;  %1598 = vmatpush3.bf16.msra.mxu1 %v1780_v38 }
 0x1c9   :  { %v943_v42 = vpop.f32.mrf.mxu0  ;;  %v984_v43 = vpop.f32.mrf.mxu1 }
 0x1ca   :  { %v944_v44 = vadd.f32 %v943_v42, %v385_v40 }
 0x1cb   :  { %v945_v45 = vpop.f32.mrf.mxu0  ;;  %v986_v46 = vpop.f32.mrf.mxu1 }
 0x1cc   :  { %v985_v47 = vadd.f32 %v984_v43, %v944_v44  ;;  %v946_v48 = vadd.f32 %v945_v45, %v389_v41 }
 0x1cd   :  { %v947_v49 = vpop.f32.mrf.mxu0  ;;  %v988_v50 = vpop.f32.mrf.mxu1 }
 0x1ce   :  { %v987_v51 = vadd.f32 %v986_v46, %v946_v48  ;;  %v1071_v52 = vmax.f32 %v985_v47, 0.0 }
 0x1cf   :  { %v948_v53 = vpop.f32.mrf.mxu0  ;;  %v989_v54 = vpop.f32.mrf.mxu1 }
 0x1d0   :  { %v1072_v55 = vmax.f32 %v987_v51, 0.0  ;;  %v1074_v57 = vpack.c.bf16 %v1071_v52, %v1071_v52 }
 0x1d2   :  { %v1075_v56 = vpack.c.bf16 %v1072_v55, %v1072_v55 }
 0x1d4   :  { %1308 = vmatprep.mubr.bf16.mxu0 %v1075_v56 }
 0x1d5   :  { %1309 = vmatmul.mubr.bf16.vlgmr.msra.gmra.mxu0 %v1074_v57 }
 0x1e9   :  { %v1524_v15 = vpop.f32.mrf.mxu0  ;;  %v1546_v18 = vpop.f32.mrf.mxu1 }
 0x1eb   :  { %v1525_v59 = vpop.f32.mrf.mxu0  ;;  %v1547_v60 = vpop.f32.mrf.mxu1 }
 0x1ec   :  { %v1526_v61 = vadd.f32 %v1525_v59, %v1524_v15  ;;  %v1548_v1 = vadd.f32 %v1547_v60, %v1546_v18 }
 0x1ed   :  { %v1527_v62 = vpop.f32.mrf.mxu0  ;;  %v1549_v63 = vpop.f32.mrf.mxu1 }
 0x1ee   :  { %v1026_v0 = vadd.f32 %v1526_v61, %v393_v58 }
 0x1ef   :  { %v1528_v2 = vpop.f32.mrf.mxu0  ;;  %v1550_v3 = vpop.f32.mrf.mxu1 }
 0x1f0   :  { %v1066_v4 = vadd.f32 %v1548_v1, %v1026_v0 }
 0x1f2   :  { %v1073_v5 = vmax.f32 %v1066_v4, 0.0 }
 0x1f4   :  { %v1076_v6 = vpack.c.bf16 %v1073_v5, %v1073_v5 }
 0x1f6   :  { %1600 = vmatmul.mubr.bf16.vlgmr.msra.gmra.mxu1 %v1076_v6 }
 0x295   :  { %v1568_v7 = vpop.f32.mrf.mxu0 }
 0x297   :  { %v1569_v8 = vpop.f32.mrf.mxu0 }
 0x298   :  { %v1570_v11 = vadd.f32 %v1569_v8, %v1568_v7 }
 0x299   :  { %v1571_v9 = vpop.f32.mrf.mxu0 }
 0x29a   :  { %v1311_v16 = vadd.f32 %v1570_v11, %v1483_v14 }
 0x29b   :  { %v1572_v10 = vpop.f32.mrf.mxu0 }
 0x2b6   :  { %v1350_v12 = vpop.f32.mrf.mxu1 }
 0x2b7   :  { %v1351_v13 = vadd.f32 %v1350_v12, %v1311_v16 }
 0x2b8   :  { %v1601_v17 = vpop.f32.mrf.mxu1 }
 0x2b9   :  { %1781 = vtanh.f32 %v1351_v13 }
 0x2ba   :  { %v1353_v19 = vpop.f32.mrf.mxu1 }
 0x2bc   :  { %v1602_v20 = vpop.f32.mrf.mxu1 }
 0x2c6   :  { %v1782_v22 = vpop.eup %1781 }
 0x2c7   :  { %v1358_v23 = vmul.f32 %v1782_v22, %v1357_v21 }
 0x2c9   :  { %1359 = vst [vmem:[#allocation11] sm:$0xff] %v1358_v23 }
 0x2ca   :  { %1874 = shalt.err (!%p1871_p10)
}
 0x2cb   :  { %1369 = dma.vmem_to_hbm [thread:$0]  %s1367_s12, 128, %s2011_s8, [#allocation5]  }
 0x2cc   :  { %1889 = dma.done.wait [#allocation5], 128  }
 0x2cd   :  { %1890 = vsyncadd [#allocation5], 4294967168 }
 0x2ce   :  { %1373 = vsyncpa [#allocation4], 1 }
 0x2cf   :  { %1374 = vsyncpa [#allocation7], 1 }
 0x2d0   :  { %1375 = vsyncpa [#allocation10], 1 }
 0x2d1   :  { %1376 = vsyncpa [#allocation5], 1 }

</bundles_post_ra>
